<compile_context>
chip_gen: v7x
topology: tpu7x:2x2x1
jax: 0.10.0
libtpu: 0.0.40
codegen_flags: <defaults>
</compile_context>

<pallas_src>
import functools

import jax
import jax.numpy as jnp
from jax.experimental import pallas as pl
from jax.experimental.pallas import tpu as pltpu

LANE = 128
SUBLANE = 8


def _round_up(x, m):
    return ((x + m - 1) // m) * m


def _sigmoid_bin_fwd_kernel(pred_ref, out_ref, *, bins, reg_mul, reg_off,
                            vmin, vmax, use_fw_regression):
    """pred_ref: (length, block_rows, 128) native dtype; out_ref: (block_rows, 128)."""
    bin_count = len(bins)

    # pred_reg = (pred[..., 0] * reg_scale - reg_scale/2) * step, folded into
    # a single multiply + subtract with compile-time constants.
    pred_reg = pred_ref[0].astype(jnp.float32) * reg_mul - reg_off

    # Unrolled argmax over the bin axis (pure VPU work on dense lane-wide
    # slabs, kept in the input's native dtype).  Strict '>' keeps first-index
    # tie-breaking like torch.max / jnp.argmax (NaN inputs are the only
    # divergence, where torch would propagate the NaN index).
    best_val = pred_ref[1]
    best_bias = jnp.full(best_val.shape, bins[0], dtype=jnp.float32)
    for k in range(1, bin_count):
        v = pred_ref[1 + k]
        take = v > best_val
        best_val = jnp.where(take, v, best_val)
        best_bias = jnp.where(take, jnp.float32(bins[k]), best_bias)

    if use_fw_regression:
        result = pred_reg + best_bias
    else:
        result = best_bias
    out_ref[...] = jnp.clip(result, vmin, vmax).astype(out_ref.dtype)


@functools.partial(
    jax.jit,
    static_argnames=("bin_count", "vmin", "vmax", "reg_scale",
                     "use_fw_regression", "block_rows"))
def sigmoid_bin_forward(pred, *, bin_count=10, vmin=0.0, vmax=1.0,
                        reg_scale=2.0, use_fw_regression=True,
                        block_rows=512):
    """Pallas implementation of SigmoidBin.forward.

    block_rows = number of 128-row lane groups per grid step
    (default 512 -> 65536 rows, ~2.75 MiB f32 input per block; sweep 256-1024).
    """
    length = bin_count + 1
    assert pred.shape[-1] == length, (
        f"pred.shape[-1]={pred.shape[-1]} is not equal to length={length}")

    scale = float(vmax - vmin)
    step = scale / bin_count
    start = vmin + scale / 2.0 / bin_count
    # torch.range(start, end + 1e-4, step) -> bin_count uniformly spaced centers
    bins = tuple(start + step * k for k in range(bin_count))
    reg_mul = reg_scale * step
    reg_off = 0.5 * reg_scale * step

    lead_shape = pred.shape[:-1]
    m = 1
    for d in lead_shape:
        m *= d

    groups_needed = max(1, -(-m // LANE))
    # Clamp the block so tiny inputs don't pad to a full-size block.
    block_rows = min(block_rows, _round_up(groups_needed, SUBLANE))
    # Keep at least 2 grid steps once there is enough work so the "parallel"
    # grid axis can shard across both TensorCores on v7x.
    if groups_needed >= 2 * SUBLANE:
        block_rows = min(block_rows,
                         _round_up(-(-groups_needed // 2), SUBLANE))
    block_rows = max(SUBLANE, block_rows)

    rows_per_block = block_rows * LANE
    m_pad = _round_up(m, rows_per_block)
    n_groups = m_pad // LANE

    # Lane-dense repack: (M, L) -> (L, M/128, 128).  Under jit the pad +
    # transpose + reshape lower to a single copy fusion.
    pred2d = pred.reshape(m, length)  # native dtype, no upcast
    if m_pad != m:
        pred2d = jnp.pad(pred2d, ((0, m_pad - m), (0, 0)))
    pred_packed = pred2d.T.reshape(length, n_groups, LANE)

    kernel = functools.partial(
        _sigmoid_bin_fwd_kernel,
        bins=bins, reg_mul=reg_mul, reg_off=reg_off,
        vmin=vmin, vmax=vmax, use_fw_regression=use_fw_regression)

    itemsize = jnp.dtype(pred.dtype).itemsize
    cost = pl.CostEstimate(
        flops=(3 * bin_count + 5) * m_pad,
        transcendentals=0,
        bytes_accessed=m_pad * (length + 1) * itemsize)

    out = pl.pallas_call(
        kernel,
        out_shape=jax.ShapeDtypeStruct((n_groups, LANE), pred.dtype),
        grid_spec=pltpu.PrefetchScalarGridSpec(
            num_scalar_prefetch=0,
            grid=(n_groups // block_rows,),
            in_specs=[
                pl.BlockSpec((length, block_rows, LANE), lambda i: (0, i, 0)),
            ],
            out_specs=pl.BlockSpec((block_rows, LANE), lambda i: (i, 0)),
        ),
        compiler_params=pltpu.CompilerParams(
            dimension_semantics=("parallel",),
            vmem_limit_bytes=32 * 1024 * 1024),
        cost_estimate=cost,
    )(pred_packed)

    return out.reshape(m_pad)[:m].reshape(lead_shape)


def sigmoid_bin_forward_ref(pred, *, bin_count=10, vmin=0.0, vmax=1.0,
                            reg_scale=2.0, use_fw_regression=True):
    """Pure-JAX reference of SigmoidBin.forward for validation."""
    scale = float(vmax - vmin)
    step = scale / bin_count
    start = vmin + scale / 2.0 / bin_count
    bins = start + step * jnp.arange(bin_count, dtype=jnp.float32)
    pred_reg = (pred[..., 0] * reg_scale - reg_scale / 2.0) * step
    pred_bin = pred[..., 1:1 + bin_count]
    bin_idx = jnp.argmax(pred_bin, axis=-1)
    bin_bias = bins[bin_idx]
    result = pred_reg + bin_bias if use_fw_regression else bin_bias
    return jnp.clip(result, vmin, vmax)


if __name__ == "__main__":
    # SigmoidBin(bin_count=10) -> length = 11 on the last axis.
    bin_count = 10
    length = bin_count + 1
    key = jax.random.PRNGKey(0)
    k1, k2 = jax.random.split(key)

    # Small shape consistent with the module's (..., length) convention.
    pred_small = jax.random.normal(k1, (2, 4, 16, length), dtype=jnp.float32)
    # Slightly larger shape that exercises padding, the row slice, and a
    # multi-step (>= 2) grid.
    pred_multi = jax.random.normal(k2, (4, 600, length), dtype=jnp.float32)

    for pred in (pred_small, pred_multi):
        out = jax.block_until_ready(
            sigmoid_bin_forward(pred, bin_count=bin_count))
        ref = sigmoid_bin_forward_ref(pred, bin_count=bin_count)
        assert out.shape == pred.shape[:-1]
        assert jnp.allclose(out, ref, atol=1e-5), "mismatch vs reference"

    print("KERNEL_OK")
</pallas_src>

<mosaic_0001>
module attributes {stable_mosaic.version = 11 : i64} {
  func.func @_sigmoid_bin_fwd_kernel(%arg0: i32, %arg1: memref<11x8x128xf32, #tpu.memory_space<vmem>>, %arg2: memref<8x128xf32, #tpu.memory_space<vmem>>) attributes {dimension_semantics = [#tpu.dimension_semantics<parallel>], iteration_bounds = array<i64: 1>, scalar_prefetch = 0 : i64, scratch_operands = 0 : i64, tpu.core_type = #tpu.core_type<tc>, window_params = [{transform_indices = @transform_0, window_bounds = array<i64: 11, 8, 128>}, {transform_indices = @transform_1, window_bounds = array<i64: 8, 128>}]} {
    %c0 = arith.constant 0 : index
    %c0_0 = arith.constant 0 : index
    %c0_1 = arith.constant 0 : index
    %0 = vector.load %arg1[%c0, %c0_0, %c0_1] : memref<11x8x128xf32, #tpu.memory_space<vmem>>, vector<1x8x128xf32>
    %1 = vector.shape_cast %0 : vector<1x8x128xf32> to vector<8x128xf32>
    %cst = arith.constant 2.000000e-01 : f32
    %2 = vector.broadcast %cst : f32 to vector<8x128xf32>
    %3 = arith.mulf %1, %2 : vector<8x128xf32>
    %cst_2 = arith.constant 1.000000e-01 : f32
    %4 = vector.broadcast %cst_2 : f32 to vector<8x128xf32>
    %5 = arith.subf %3, %4 : vector<8x128xf32>
    %c1 = arith.constant 1 : index
    %c0_3 = arith.constant 0 : index
    %c0_4 = arith.constant 0 : index
    %6 = vector.load %arg1[%c1, %c0_3, %c0_4] : memref<11x8x128xf32, #tpu.memory_space<vmem>>, vector<1x8x128xf32>
    %7 = vector.shape_cast %6 : vector<1x8x128xf32> to vector<8x128xf32>
    %cst_5 = arith.constant 5.000000e-02 : f32
    %8 = vector.broadcast %cst_5 : f32 to vector<8x128xf32>
    %c2 = arith.constant 2 : index
    %c0_6 = arith.constant 0 : index
    %c0_7 = arith.constant 0 : index
    %9 = vector.load %arg1[%c2, %c0_6, %c0_7] : memref<11x8x128xf32, #tpu.memory_space<vmem>>, vector<1x8x128xf32>
    %10 = vector.shape_cast %9 : vector<1x8x128xf32> to vector<8x128xf32>
    %11 = arith.cmpf ogt, %10, %7 : vector<8x128xf32>
    %12 = arith.select %11, %10, %7 : vector<8x128xi1>, vector<8x128xf32>
    %cst_8 = arith.constant 1.500000e-01 : f32
    %13 = vector.broadcast %cst_8 : f32 to vector<8x128xf32>
    %14 = arith.select %11, %13, %8 : vector<8x128xi1>, vector<8x128xf32>
    %c3 = arith.constant 3 : index
    %c0_9 = arith.constant 0 : index
    %c0_10 = arith.constant 0 : index
    %15 = vector.load %arg1[%c3, %c0_9, %c0_10] : memref<11x8x128xf32, #tpu.memory_space<vmem>>, vector<1x8x128xf32>
    %16 = vector.shape_cast %15 : vector<1x8x128xf32> to vector<8x128xf32>
    %17 = arith.cmpf ogt, %16, %12 : vector<8x128xf32>
    %18 = arith.select %17, %16, %12 : vector<8x128xi1>, vector<8x128xf32>
    %cst_11 = arith.constant 2.500000e-01 : f32
    %19 = vector.broadcast %cst_11 : f32 to vector<8x128xf32>
    %20 = arith.select %17, %19, %14 : vector<8x128xi1>, vector<8x128xf32>
    %c4 = arith.constant 4 : index
    %c0_12 = arith.constant 0 : index
    %c0_13 = arith.constant 0 : index
    %21 = vector.load %arg1[%c4, %c0_12, %c0_13] : memref<11x8x128xf32, #tpu.memory_space<vmem>>, vector<1x8x128xf32>
    %22 = vector.shape_cast %21 : vector<1x8x128xf32> to vector<8x128xf32>
    %23 = arith.cmpf ogt, %22, %18 : vector<8x128xf32>
    %24 = arith.select %23, %22, %18 : vector<8x128xi1>, vector<8x128xf32>
    %cst_14 = arith.constant 3.500000e-01 : f32
    %25 = vector.broadcast %cst_14 : f32 to vector<8x128xf32>
    %26 = arith.select %23, %25, %20 : vector<8x128xi1>, vector<8x128xf32>
    %c5 = arith.constant 5 : index
    %c0_15 = arith.constant 0 : index
    %c0_16 = arith.constant 0 : index
    %27 = vector.load %arg1[%c5, %c0_15, %c0_16] : memref<11x8x128xf32, #tpu.memory_space<vmem>>, vector<1x8x128xf32>
    %28 = vector.shape_cast %27 : vector<1x8x128xf32> to vector<8x128xf32>
    %29 = arith.cmpf ogt, %28, %24 : vector<8x128xf32>
    %30 = arith.select %29, %28, %24 : vector<8x128xi1>, vector<8x128xf32>
    %cst_17 = arith.constant 4.500000e-01 : f32
    %31 = vector.broadcast %cst_17 : f32 to vector<8x128xf32>
    %32 = arith.select %29, %31, %26 : vector<8x128xi1>, vector<8x128xf32>
    %c6 = arith.constant 6 : index
    %c0_18 = arith.constant 0 : index
    %c0_19 = arith.constant 0 : index
    %33 = vector.load %arg1[%c6, %c0_18, %c0_19] : memref<11x8x128xf32, #tpu.memory_space<vmem>>, vector<1x8x128xf32>
    %34 = vector.shape_cast %33 : vector<1x8x128xf32> to vector<8x128xf32>
    %35 = arith.cmpf ogt, %34, %30 : vector<8x128xf32>
    %36 = arith.select %35, %34, %30 : vector<8x128xi1>, vector<8x128xf32>
    %cst_20 = arith.constant 5.500000e-01 : f32
    %37 = vector.broadcast %cst_20 : f32 to vector<8x128xf32>
    %38 = arith.select %35, %37, %32 : vector<8x128xi1>, vector<8x128xf32>
    %c7 = arith.constant 7 : index
    %c0_21 = arith.constant 0 : index
    %c0_22 = arith.constant 0 : index
    %39 = vector.load %arg1[%c7, %c0_21, %c0_22] : memref<11x8x128xf32, #tpu.memory_space<vmem>>, vector<1x8x128xf32>
    %40 = vector.shape_cast %39 : vector<1x8x128xf32> to vector<8x128xf32>
    %41 = arith.cmpf ogt, %40, %36 : vector<8x128xf32>
    %42 = arith.select %41, %40, %36 : vector<8x128xi1>, vector<8x128xf32>
    %cst_23 = arith.constant 6.500000e-01 : f32
    %43 = vector.broadcast %cst_23 : f32 to vector<8x128xf32>
    %44 = arith.select %41, %43, %38 : vector<8x128xi1>, vector<8x128xf32>
    %c8 = arith.constant 8 : index
    %c0_24 = arith.constant 0 : index
    %c0_25 = arith.constant 0 : index
    %45 = vector.load %arg1[%c8, %c0_24, %c0_25] : memref<11x8x128xf32, #tpu.memory_space<vmem>>, vector<1x8x128xf32>
    %46 = vector.shape_cast %45 : vector<1x8x128xf32> to vector<8x128xf32>
    %47 = arith.cmpf ogt, %46, %42 : vector<8x128xf32>
    %48 = arith.select %47, %46, %42 : vector<8x128xi1>, vector<8x128xf32>
    %cst_26 = arith.constant 7.500000e-01 : f32
    %49 = vector.broadcast %cst_26 : f32 to vector<8x128xf32>
    %50 = arith.select %47, %49, %44 : vector<8x128xi1>, vector<8x128xf32>
    %c9 = arith.constant 9 : index
    %c0_27 = arith.constant 0 : index
    %c0_28 = arith.constant 0 : index
    %51 = vector.load %arg1[%c9, %c0_27, %c0_28] : memref<11x8x128xf32, #tpu.memory_space<vmem>>, vector<1x8x128xf32>
    %52 = vector.shape_cast %51 : vector<1x8x128xf32> to vector<8x128xf32>
    %53 = arith.cmpf ogt, %52, %48 : vector<8x128xf32>
    %54 = arith.select %53, %52, %48 : vector<8x128xi1>, vector<8x128xf32>
    %cst_29 = arith.constant 8.500000e-01 : f32
    %55 = vector.broadcast %cst_29 : f32 to vector<8x128xf32>
    %56 = arith.select %53, %55, %50 : vector<8x128xi1>, vector<8x128xf32>
    %c10 = arith.constant 10 : index
    %c0_30 = arith.constant 0 : index
    %c0_31 = arith.constant 0 : index
    %57 = vector.load %arg1[%c10, %c0_30, %c0_31] : memref<11x8x128xf32, #tpu.memory_space<vmem>>, vector<1x8x128xf32>
    %58 = vector.shape_cast %57 : vector<1x8x128xf32> to vector<8x128xf32>
    %59 = arith.cmpf ogt, %58, %54 : vector<8x128xf32>
    %cst_32 = arith.constant 0.949999988 : f32
    %60 = vector.broadcast %cst_32 : f32 to vector<8x128xf32>
    %61 = arith.select %59, %60, %56 : vector<8x128xi1>, vector<8x128xf32>
    %62 = arith.addf %5, %61 : vector<8x128xf32>
    %cst_33 = arith.constant 0.000000e+00 : f32
    %cst_34 = arith.constant 1.000000e+00 : f32
    %63 = vector.broadcast %cst_33 : f32 to vector<8x128xf32>
    %64 = arith.maximumf %63, %62 : vector<8x128xf32>
    %65 = vector.broadcast %cst_34 : f32 to vector<8x128xf32>
    %66 = arith.minimumf %65, %64 : vector<8x128xf32>
    %c0_35 = arith.constant 0 : index
    %c0_36 = arith.constant 0 : index
    %67 = vector.load %arg2[%c0_35, %c0_36] : memref<8x128xf32, #tpu.memory_space<vmem>>, vector<8x128xf32>
    tpu.vector_store %arg2[%c0_35, %c0_36], %66 {strides = array<i32>} : memref<8x128xf32, #tpu.memory_space<vmem>>, vector<8x128xf32>,
    return
  }
  func.func @transform_0(%arg0: i32) -> (i32, i32, i32) {
    %c0_i32 = arith.constant 0 : i32
    %c0_i32_0 = arith.constant 0 : i32
    %c0_i32_1 = arith.constant 0 : i32
    return %c0_i32, %arg0, %c0_i32_0 : i32, i32, i32
  }
  func.func @transform_1(%arg0: i32) -> (i32, i32) {
    %c0_i32 = arith.constant 0 : i32
    %c0_i32_0 = arith.constant 0 : i32
    return %arg0, %c0_i32 : i32, i32
  }
}

</mosaic_0001>

<bundles_post_ra>
// kernel: sigmoid_bin_forward.1
= control target key start
LH: loop header
LB: loop body
LE: loop exit
PB: predicated region body
PF: predicated region fallthrough
CT: control target
= control target key end

     0   :  { %v77_v4 = vmov 0.05   ;;  %s124_s0 = inlined_call_operand.vmem [shape: f32[11,8,128], index: 0, kind: input, shape index: {}]   ;;  %s125_s1 = inlined_call_operand.vmem [shape: f32[8,128], index: 1, kind: output, shape index: {}]  }
   0x1   :  { %v66_v0 = vld [vmem:[%s124_s0 + $0x8] sm:$0xff]  ;;  %v67_v1 = vld [vmem:[%s124_s0 + $0x10] sm:$0xff]  ;;  %v68_v2 = vld [vmem:[%s124_s0 + $0x18] sm:$0xff] }
   0x2   :  { %vm15_vm0 = vcmp.gt.f32.partialorder %v67_v1, %v66_v0  ;;  %v69_v6 = vld [vmem:[%s124_s0 + $0x20] sm:$0xff]  ;;  %v70_v9 = vld [vmem:[%s124_s0 + $0x28] sm:$0xff]  ;;  %v71_v12 = vld [vmem:[%s124_s0 + $0x30] sm:$0xff] }
   0x3   :  { %v16_v3 = vsel %vm15_vm0, %v67_v1, %v66_v0  ;;  %v17_v5 = vsel %vm15_vm0, 0.15, %v77_v4  ;;  %v8_v13 = vld [vmem:[%s124_s0] sm:$0xff]  ;;  %v72_v16 = vld [vmem:[%s124_s0 + $0x38] sm:$0xff]  ;;  %v74_v23 = vld [vmem:[%s124_s0 + $0x48] sm:$0xff] }
   0x4   :  { %vm20_vm1 = vcmp.gt.f32.partialorder %v68_v2, %v16_v3  ;;  %v73_v19 = vld [vmem:[%s124_s0 + $0x40] sm:$0xff]  ;;  %v9_v20 = vmul.f32 0.2, %v8_v13  ;;  %v75_v26 = vld [vmem:[%s124_s0 + $0x50] sm:$0xff] }
   0x5   :  { %v21_v7 = vsel %vm20_vm1, %v68_v2, %v16_v3  ;;  %v22_v8 = vsel %vm20_vm1, 0.25, %v17_v5 }
   0x6   :  { %vm25_vm2 = vcmp.gt.f32.partialorder %v69_v6, %v21_v7  ;;  %v65_v27 = vadd.f32 -0.1, %v9_v20 }
   0x7   :  { %v26_v10 = vsel %vm25_vm2, %v69_v6, %v21_v7  ;;  %v27_v11 = vsel %vm25_vm2, 0.35, %v22_v8 }
   0x8   :  { %vm30_vm3 = vcmp.gt.f32.partialorder %v70_v9, %v26_v10 }
   0x9   :  { %v31_v14 = vsel %vm30_vm3, %v70_v9, %v26_v10  ;;  %v32_v15 = vsel %vm30_vm3, 0.45, %v27_v11 }
   0xa   :  { %vm35_vm4 = vcmp.gt.f32.partialorder %v71_v12, %v31_v14 }
   0xb   :  { %v36_v17 = vsel %vm35_vm4, %v71_v12, %v31_v14  ;;  %v37_v18 = vsel %vm35_vm4, 0.55, %v32_v15 }
   0xc   :  { %vm40_vm5 = vcmp.gt.f32.partialorder %v72_v16, %v36_v17 }
   0xd   :  { %v41_v21 = vsel %vm40_vm5, %v72_v16, %v36_v17  ;;  %v42_v22 = vsel %vm40_vm5, 0.65, %v37_v18 }
   0xe   :  { %vm45_vm6 = vcmp.gt.f32.partialorder %v73_v19, %v41_v21 }
   0xf   :  { %v46_v24 = vsel %vm45_vm6, %v73_v19, %v41_v21  ;;  %v47_v25 = vsel %vm45_vm6, 0.75, %v42_v22 }
  0x10   :  { %vm50_vm7 = vcmp.gt.f32.partialorder %v74_v23, %v46_v24 }
  0x11   :  { %v51_v28 = vsel %vm50_vm7, %v74_v23, %v46_v24  ;;  %v52_v29 = vsel %vm50_vm7, 0.85, %v47_v25 }
  0x12   :  { %vm55_vm8 = vcmp.gt.f32.partialorder %v75_v26, %v51_v28 }
  0x13   :  { %v56_v30 = vsel %vm55_vm8, 0.95, %v52_v29 }
  0x14   :  { %v57_v31 = vadd.f32 %v65_v27, %v56_v30 }
  0x16   :  { %v58_v32 = vmax.f32 %v57_v31, 0.0 }
  0x18   :  { %v59_v33 = vmin.f32 %v58_v32, 1.0 }
  0x1a   :  { %60 = vst [vmem:[%s125_s1] sm:$0xff] %v59_v33 }

</bundles_post_ra>
